<compile_context>
chip_gen: v7x
topology: tpu7x:2x2x1
jax: 0.10.0
libtpu: 0.0.40
codegen_flags: <defaults>
</compile_context>

<pallas_src>
import math

import jax
import jax.numpy as jnp
from jax.experimental import pallas as pl
from jax.experimental.pallas import tpu as pltpu


def _stsc_kernel(x_ref, w_ref, thr_ref, wl_ref, out_ref, h_ref):
    # x_ref  : (T, block_b*N)      lane-dense input slab (columns are b-major: b*N + n)
    # w_ref  : (K, g*N, g*R)       per-tap block-diagonal conv weights kron(I_g, W_k)
    # thr_ref: (1, g*R)            spike threshold with the conv bias folded in (1 - b)
    # wl_ref : (g*R, g*N)          block-diagonal linear weights kron(I_g, W_lin^T), f32
    # out_ref: (T_out, block_b*N)  lane-dense output slab D = 1 - Linear(spike)
    # h_ref  : (T_out, g*R) f32    VMEM accumulator for the conv of one lane group
    T = x_ref.shape[0]
    T_out = out_ref.shape[0]
    K, gN, gR = w_ref.shape
    pad = (K - 1) // 2
    n_sub = x_ref.shape[1] // gN

    thr = thr_ref[...]                                        # (1, gR), f32

    # Tap k == pad always covers the full [0, T_out) range (T_out <= T), so it goes
    # first and initialises h_ref with `=`; the remaining taps accumulate with `+=`.
    taps = [pad] + [k for k in range(K) if k != pad]

    for j in range(n_sub):                                    # static unroll, lane groups
        c0 = j * gN
        for idx, k in enumerate(taps):                        # static K-tap accumulation
            t_lo = max(0, pad - k)                            # valid output rows for tap k
            t_hi = min(T_out, T + pad - k)
            if t_hi <= t_lo:
                continue
            src = t_lo - pad + k                              # first input row for tap k
            xk = x_ref[src:src + (t_hi - t_lo), c0:c0 + gN]   # native dtype (f32 or bf16)
            contrib = jnp.dot(xk, w_ref[k], preferred_element_type=jnp.float32)
            if idx == 0:
                h_ref[...] = contrib
            else:
                h_ref[t_lo:t_hi, :] += contrib

        # LIF (single step, fresh state, decay_input=False): v = h_conv, spike = (v >= 1),
        # with the bias folded into the threshold: h_no_bias >= 1 - bias.
        spikes = (h_ref[...] >= thr).astype(jnp.float32)      # (T_out, gR)
        proj = jnp.dot(spikes, wl_ref[...], preferred_element_type=jnp.float32)
        out_ref[:, c0:c0 + gN] = (1.0 - proj).astype(out_ref.dtype)


def _lane_group(n, r, k, elem_bytes, budget_bytes=2 << 20):
    """Fewest batch elements per matmul group so the (b, n) slab width is a multiple of
    128 lanes; bumped so the reduced (b, r) slab is lane-dense too when the resulting
    block-diagonal weights stay tiny.  g == 1 when n is already a multiple of 128."""
    g = 128 // math.gcd(128, n)
    g_full = g
    while (g_full * r) % 128:
        g_full += g
    if (k + 1) * (g_full * n) * (g_full * r) * elem_bytes <= budget_bytes:
        return g_full
    return g


def _pick_block_b(b_pad, g, t, t_out, n, in_bytes, out_bytes,
                  target_bytes=8 << 20, min_steps=8):
    """Largest batch block (multiple of the lane group, dividing the padded batch) whose
    double-buffered in+out tiles fit ~half the smallest scoped-VMEM default while keeping
    >= min_steps grid steps when the batch allows it.  Never silently falls back to the
    whole batch unless it is the only lane-dense choice."""
    cands = [bb for bb in range(g, b_pad + 1, g) if b_pad % bb == 0]

    def footprint(bb):                      # 2x = BlockSpec double buffering
        return 2 * (t * bb * n * in_bytes + t_out * bb * n * out_bytes)

    for want_steps in (min_steps, 2, 1):
        fit = [bb for bb in cands
               if footprint(bb) <= target_bytes and b_pad // bb >= want_steps]
        if fit:
            return max(fit)
    return cands[0]


def stsc_attention_lif(x_seq, w_conv, b_conv, w_lin, *, time_rf,
                       block_b=None, out_dtype=jnp.float32):
    """x_seq: [T, B, N] (f32 or bf16); w_conv: [R, N, K]; b_conv: [R]; w_lin: [N, R].
    Returns D: [T_out, B, N].  out_dtype=bf16 halves output HBM traffic if downstream
    tolerates it (default f32 for exactness)."""
    T, B, N = x_seq.shape
    R, N_in, K = w_conv.shape
    assert K == time_rf and N_in == N and T >= K
    pad = (K - 1) // 2
    T_out = T + 2 * pad - K + 1
    assert T_out >= 1

    cdtype = x_seq.dtype                    # feed the MXU in the input's precision
    in_bytes = jnp.dtype(cdtype).itemsize
    out_bytes = jnp.dtype(out_dtype).itemsize

    g = _lane_group(N, R, K, in_bytes)
    if K * (g * N) * (g * R) * in_bytes > (8 << 20):
        # TODO(synk): for large channel counts that are not multiples of 128 (e.g. raw
        # SHD N=700), pad n_channel to a multiple of 128 so g == 1 instead of paying a
        # g^2 block-diagonal weight blow-up.
        raise ValueError("pad n_channel to a multiple of 128 for this configuration")

    # Lane-dense [T, B*N] view (free reshape of contiguous HBM).  Pad the batch to a
    # multiple of the lane group so every block's last dim is a multiple of 128.
    B_pad = ((B + g - 1) // g) * g
    x2 = x_seq.reshape(T, B * N)
    if B_pad != B:
        x2 = jnp.pad(x2, ((0, 0), (0, (B_pad - B) * N)))

    # Block-diagonal weights kron(I_g, W) keep the g batch elements of a lane group
    # independent inside one dense MXU matmul (compute is <1% of the HBM roofline, so
    # the g-fold MXU inflation is free).  Conv weights match the input dtype; the
    # linear weights and threshold stay f32.
    eye = jnp.eye(g, dtype=jnp.float32)
    w_taps = jnp.stack([jnp.kron(eye, w_conv[:, :, k].T.astype(jnp.float32))
                        for k in range(K)]).astype(cdtype)            # (K, g*N, g*R)
    thr = jnp.tile(1.0 - b_conv.astype(jnp.float32), g).reshape(1, g * R)
    wl = jnp.kron(eye, w_lin.T.astype(jnp.float32))                   # (g*R, g*N)

    if block_b is None:
        block_b = _pick_block_b(B_pad, g, T, T_out, N, in_bytes, out_bytes)
    assert block_b % g == 0 and B_pad % block_b == 0
    grid = (B_pad // block_b,)

    weight_bytes = w_taps.size * in_bytes + (wl.size + thr.size) * 4
    tile_bytes = 2 * (T * block_b * N * in_bytes + T_out * block_b * N * out_bytes)
    scratch_bytes = T_out * g * R * 4
    vmem_limit = min(max(int(1.25 * tile_bytes) + weight_bytes + scratch_bytes
                         + (1 << 20), 4 << 20), 32 << 20)

    n_sub = block_b // g
    flops = 2 * (B_pad // block_b) * n_sub * T_out * (g * N) * (g * R) * (K + 1)
    bytes_accessed = (x2.size * in_bytes + T_out * B_pad * N * out_bytes + weight_bytes)

    out2 = pl.pallas_call(
        _stsc_kernel,
        out_shape=jax.ShapeDtypeStruct((T_out, B_pad * N), out_dtype),
        grid=grid,
        in_specs=[
            pl.BlockSpec((T, block_b * N), lambda i: (0, i)),          # x slab (full time)
            pl.BlockSpec((K, g * N, g * R), lambda i: (0, 0, 0)),      # conv taps (resident)
            pl.BlockSpec((1, g * R), lambda i: (0, 0)),                # folded threshold
            pl.BlockSpec((g * R, g * N), lambda i: (0, 0)),            # linear weight
        ],
        out_specs=pl.BlockSpec((T_out, block_b * N), lambda i: (0, i)),
        scratch_shapes=[pltpu.VMEM((T_out, g * R), jnp.float32)],
        compiler_params=pltpu.CompilerParams(
            dimension_semantics=("parallel",),                         # megacore sharding
            vmem_limit_bytes=vmem_limit,
        ),
        cost_estimate=pl.CostEstimate(
            flops=flops, transcendentals=0, bytes_accessed=bytes_accessed),
    )(x2, w_taps, thr, wl)

    return out2.reshape(T_out, B_pad, N)[:, :B, :]                     # [T_out, B, N]


def _reference(x_seq, w_conv, b_conv, w_lin, *, time_rf):
    """Pure-JAX reference mirroring the PyTorch forward (dimension == 2)."""
    pad = (time_rf - 1) // 2
    x_T = jnp.transpose(x_seq, (1, 2, 0))                 # [B, N, T]
    h = jax.lax.conv_general_dilated(
        x_T, w_conv, window_strides=(1,), padding=[(pad, pad)],
        dimension_numbers=('NCH', 'OIH', 'NCH'))          # [B, R, T_out]
    h = h + b_conv[None, :, None]
    hT = jnp.transpose(h, (0, 2, 1))                      # [B, T_out, R]
    spikes = (hT >= 1.0).astype(jnp.float32)              # LIF single step, fresh v=0
    D_ = 1.0 - spikes @ w_lin.T                           # [B, T_out, N]
    return jnp.transpose(D_, (1, 0, 2))                   # [T_out, B, N]


def _run_case(key, *, T, B, N, reduction, time_rf, block_b=None):
    R = N // reduction
    k_x, k_w, k_b, k_l = jax.random.split(key, 4)
    x_seq = jax.random.normal(k_x, (T, B, N), dtype=jnp.float32)
    w_conv = jax.random.uniform(k_w, (R, N, time_rf), jnp.float32, -0.3, 0.3)
    b_conv = jax.random.uniform(k_b, (R,), jnp.float32, -0.1, 0.1)
    w_lin = jax.random.uniform(k_l, (N, R), jnp.float32, -0.3, 0.3)

    d = stsc_attention_lif(x_seq, w_conv, b_conv, w_lin,
                           time_rf=time_rf, block_b=block_b)
    d = jax.block_until_ready(d)

    d_ref = _reference(x_seq, w_conv, b_conv, w_lin, time_rf=time_rf)
    assert d.shape == d_ref.shape, (d.shape, d_ref.shape)
    err = float(jnp.max(jnp.abs(d - d_ref)))
    assert err < 1e-3, err


if __name__ == "__main__":
    key = jax.random.PRNGKey(0)
    k1, k2, k3 = jax.random.split(key, 3)
    # Pipelined case: lane group g=8 (8*32 = 256 lanes), batch tiled in blocks of 8 -> grid (2,).
    _run_case(k1, T=12, B=16, N=32, reduction=2, time_rf=4)
    # Odd receptive field (time_rf=3, T_out == T), single-step grid.
    _run_case(k2, T=8, B=8, N=32, reduction=2, time_rf=3)
    # Batch not a multiple of the lane group: exercises the wrapper-side batch padding.
    _run_case(k3, T=10, B=6, N=32, reduction=2, time_rf=4)
    print("KERNEL_OK")
</pallas_src>

<mosaic_0001>
module attributes {stable_mosaic.version = 11 : i64} {
  func.func @_stsc_kernel(%arg0: i32, %arg1: memref<12x256xf32, #tpu.memory_space<vmem>>, %arg2: memref<4x256x128xf32, #tpu.memory_space<vmem>>, %arg3: memref<1x128xf32, #tpu.memory_space<vmem>>, %arg4: memref<128x256xf32, #tpu.memory_space<vmem>>, %arg5: memref<11x256xf32, #tpu.memory_space<vmem>>, %arg6: memref<11x128xf32, #tpu.memory_space<vmem>>) attributes {dimension_semantics = [#tpu.dimension_semantics<parallel>], iteration_bounds = array<i64: 2>, scalar_prefetch = 0 : i64, scratch_operands = 1 : i64, tpu.core_type = #tpu.core_type<tc>, window_params = [{transform_indices = @transform_0, window_bounds = array<i64: 12, 256>}, {pipeline_mode = #tpu.pipeline_mode<synchronous>, transform_indices = @transform_1, window_bounds = array<i64: 4, 256, 128>}, {pipeline_mode = #tpu.pipeline_mode<synchronous>, transform_indices = @transform_2, window_bounds = array<i64: 1, 128>}, {pipeline_mode = #tpu.pipeline_mode<synchronous>, transform_indices = @transform_3, window_bounds = array<i64: 128, 256>}, {transform_indices = @transform_4, window_bounds = array<i64: 11, 256>}]} {
    %c0 = arith.constant 0 : index
    %c0_0 = arith.constant 0 : index
    %0 = vector.load %arg3[%c0, %c0_0] : memref<1x128xf32, #tpu.memory_space<vmem>>, vector<1x128xf32>
    %c0_1 = arith.constant 0 : index
    %c0_2 = arith.constant 0 : index
    %1 = vector.load %arg1[%c0_1, %c0_2] : memref<12x256xf32, #tpu.memory_space<vmem>>, vector<11x256xf32>
    %c1 = arith.constant 1 : index
    %c0_3 = arith.constant 0 : index
    %c0_4 = arith.constant 0 : index
    %2 = vector.load %arg2[%c1, %c0_3, %c0_4] : memref<4x256x128xf32, #tpu.memory_space<vmem>>, vector<1x256x128xf32>
    %3 = vector.shape_cast %2 : vector<1x256x128xf32> to vector<256x128xf32>
    %cst = arith.constant dense<0.000000e+00> : vector<11x128xf32>
    %4 = tpu.matmul %1, %3, %cst {dimension_numbers = #tpu.dot_dimension_numbers<[1], [0], [0], [1], [0, 0, 1, 1], [], []>} : vector<11x256xf32>, vector<256x128xf32>, vector<11x128xf32> -> vector<11x128xf32>
    %c0_5 = arith.constant 0 : index
    %c0_6 = arith.constant 0 : index
    %5 = vector.load %arg6[%c0_5, %c0_6] : memref<11x128xf32, #tpu.memory_space<vmem>>, vector<11x128xf32>
    tpu.vector_store %arg6[%c0_5, %c0_6], %4 {strides = array<i32>} : memref<11x128xf32, #tpu.memory_space<vmem>>, vector<11x128xf32>,
    %c0_7 = arith.constant 0 : index
    %c0_8 = arith.constant 0 : index
    %6 = vector.load %arg1[%c0_7, %c0_8] : memref<12x256xf32, #tpu.memory_space<vmem>>, vector<10x256xf32>
    %c0_9 = arith.constant 0 : index
    %c0_10 = arith.constant 0 : index
    %c0_11 = arith.constant 0 : index
    %7 = vector.load %arg2[%c0_9, %c0_10, %c0_11] : memref<4x256x128xf32, #tpu.memory_space<vmem>>, vector<1x256x128xf32>
    %8 = vector.shape_cast %7 : vector<1x256x128xf32> to vector<256x128xf32>
    %cst_12 = arith.constant dense<0.000000e+00> : vector<10x128xf32>
    %9 = tpu.matmul %6, %8, %cst_12 {dimension_numbers = #tpu.dot_dimension_numbers<[1], [0], [0], [1], [0, 0, 1, 1], [], []>} : vector<10x256xf32>, vector<256x128xf32>, vector<10x128xf32> -> vector<10x128xf32>
    %c1_13 = arith.constant 1 : index
    %c0_14 = arith.constant 0 : index
    %10 = vector.load %arg6[%c1_13, %c0_14] : memref<11x128xf32, #tpu.memory_space<vmem>>, vector<10x128xf32>
    %11 = arith.addf %10, %9 : vector<10x128xf32>
    %c1_15 = arith.constant 1 : index
    %c0_16 = arith.constant 0 : index
    %12 = vector.load %arg6[%c1_15, %c0_16] : memref<11x128xf32, #tpu.memory_space<vmem>>, vector<10x128xf32>
    tpu.vector_store %arg6[%c1_15, %c0_16], %11 {strides = array<i32>} : memref<11x128xf32, #tpu.memory_space<vmem>>, vector<10x128xf32>,
    %c1_17 = arith.constant 1 : index
    %c0_18 = arith.constant 0 : index
    %13 = vector.load %arg1[%c1_17, %c0_18] : memref<12x256xf32, #tpu.memory_space<vmem>>, vector<11x256xf32>
    %c2 = arith.constant 2 : index
    %c0_19 = arith.constant 0 : index
    %c0_20 = arith.constant 0 : index
    %14 = vector.load %arg2[%c2, %c0_19, %c0_20] : memref<4x256x128xf32, #tpu.memory_space<vmem>>, vector<1x256x128xf32>
    %15 = vector.shape_cast %14 : vector<1x256x128xf32> to vector<256x128xf32>
    %cst_21 = arith.constant dense<0.000000e+00> : vector<11x128xf32>
    %16 = tpu.matmul %13, %15, %cst_21 {dimension_numbers = #tpu.dot_dimension_numbers<[1], [0], [0], [1], [0, 0, 1, 1], [], []>} : vector<11x256xf32>, vector<256x128xf32>, vector<11x128xf32> -> vector<11x128xf32>
    %c0_22 = arith.constant 0 : index
    %c0_23 = arith.constant 0 : index
    %17 = vector.load %arg6[%c0_22, %c0_23] : memref<11x128xf32, #tpu.memory_space<vmem>>, vector<11x128xf32>
    %18 = arith.addf %17, %16 : vector<11x128xf32>
    %c0_24 = arith.constant 0 : index
    %c0_25 = arith.constant 0 : index
    %19 = vector.load %arg6[%c0_24, %c0_25] : memref<11x128xf32, #tpu.memory_space<vmem>>, vector<11x128xf32>
    tpu.vector_store %arg6[%c0_24, %c0_25], %18 {strides = array<i32>} : memref<11x128xf32, #tpu.memory_space<vmem>>, vector<11x128xf32>,
    %c2_26 = arith.constant 2 : index
    %c0_27 = arith.constant 0 : index
    %20 = vector.load %arg1[%c2_26, %c0_27] : memref<12x256xf32, #tpu.memory_space<vmem>>, vector<10x256xf32>
    %c3 = arith.constant 3 : index
    %c0_28 = arith.constant 0 : index
    %c0_29 = arith.constant 0 : index
    %21 = vector.load %arg2[%c3, %c0_28, %c0_29] : memref<4x256x128xf32, #tpu.memory_space<vmem>>, vector<1x256x128xf32>
    %22 = vector.shape_cast %21 : vector<1x256x128xf32> to vector<256x128xf32>
    %cst_30 = arith.constant dense<0.000000e+00> : vector<10x128xf32>
    %23 = tpu.matmul %20, %22, %cst_30 {dimension_numbers = #tpu.dot_dimension_numbers<[1], [0], [0], [1], [0, 0, 1, 1], [], []>} : vector<10x256xf32>, vector<256x128xf32>, vector<10x128xf32> -> vector<10x128xf32>
    %c0_31 = arith.constant 0 : index
    %c0_32 = arith.constant 0 : index
    %24 = vector.load %arg6[%c0_31, %c0_32] : memref<11x128xf32, #tpu.memory_space<vmem>>, vector<10x128xf32>
    %25 = arith.addf %24, %23 : vector<10x128xf32>
    %c0_33 = arith.constant 0 : index
    %c0_34 = arith.constant 0 : index
    %26 = vector.load %arg6[%c0_33, %c0_34] : memref<11x128xf32, #tpu.memory_space<vmem>>, vector<10x128xf32>
    tpu.vector_store %arg6[%c0_33, %c0_34], %25 {strides = array<i32>} : memref<11x128xf32, #tpu.memory_space<vmem>>, vector<10x128xf32>,
    %c0_35 = arith.constant 0 : index
    %c0_36 = arith.constant 0 : index
    %27 = vector.load %arg6[%c0_35, %c0_36] : memref<11x128xf32, #tpu.memory_space<vmem>>, vector<11x128xf32>
    %28 = vector.broadcast %0 : vector<1x128xf32> to vector<11x128xf32>
    %29 = arith.cmpf oge, %27, %28 : vector<11x128xf32>
    %30 = arith.extui %29 : vector<11x128xi1> to vector<11x128xi32>
    %31 = arith.sitofp %30 : vector<11x128xi32> to vector<11x128xf32>
    %c0_37 = arith.constant 0 : index
    %c0_38 = arith.constant 0 : index
    %32 = vector.load %arg4[%c0_37, %c0_38] : memref<128x256xf32, #tpu.memory_space<vmem>>, vector<128x256xf32>
    %cst_39 = arith.constant dense<0.000000e+00> : vector<11x256xf32>
    %33 = tpu.matmul %31, %32, %cst_39 {dimension_numbers = #tpu.dot_dimension_numbers<[1], [0], [0], [1], [0, 0, 1, 1], [], []>} : vector<11x128xf32>, vector<128x256xf32>, vector<11x256xf32> -> vector<11x256xf32>
    %cst_40 = arith.constant 1.000000e+00 : f32
    %34 = vector.broadcast %cst_40 : f32 to vector<11x256xf32>
    %35 = arith.subf %34, %33 : vector<11x256xf32>
    %c0_41 = arith.constant 0 : index
    %c0_42 = arith.constant 0 : index
    %36 = vector.load %arg5[%c0_41, %c0_42] : memref<11x256xf32, #tpu.memory_space<vmem>>, vector<11x256xf32>
    tpu.vector_store %arg5[%c0_41, %c0_42], %35 {strides = array<i32>} : memref<11x256xf32, #tpu.memory_space<vmem>>, vector<11x256xf32>,
    return
  }
  func.func @transform_0(%arg0: i32) -> (i32, i32) {
    %c0_i32 = arith.constant 0 : i32
    %c0_i32_0 = arith.constant 0 : i32
    return %c0_i32, %arg0 : i32, i32
  }
  func.func @transform_1(%arg0: i32) -> (i32, i32, i32) {
    %c0_i32 = arith.constant 0 : i32
    %c0_i32_0 = arith.constant 0 : i32
    %c0_i32_1 = arith.constant 0 : i32
    %c0_i32_2 = arith.constant 0 : i32
    return %c0_i32, %c0_i32_0, %c0_i32_1 : i32, i32, i32
  }
  func.func @transform_2(%arg0: i32) -> (i32, i32) {
    %c0_i32 = arith.constant 0 : i32
    %c0_i32_0 = arith.constant 0 : i32
    %c0_i32_1 = arith.constant 0 : i32
    return %c0_i32, %c0_i32_0 : i32, i32
  }
  func.func @transform_3(%arg0: i32) -> (i32, i32) {
    %c0_i32 = arith.constant 0 : i32
    %c0_i32_0 = arith.constant 0 : i32
    %c0_i32_1 = arith.constant 0 : i32
    return %c0_i32, %c0_i32_0 : i32, i32
  }
  func.func @transform_4(%arg0: i32) -> (i32, i32) {
    %c0_i32 = arith.constant 0 : i32
    %c0_i32_0 = arith.constant 0 : i32
    return %c0_i32, %arg0 : i32, i32
  }
}

</mosaic_0001>

<bundles_post_ra>
// kernel: tpu_custom_call.1
= control target key start
LH: loop header
LB: loop body
LE: loop exit
PB: predicated region body
PF: predicated region fallthrough
CT: control target
= control target key end

     0   :  { %s1881_s0 = inlined_call_operand.hbm [shape: f32[12,512], index: 0, kind: input, shape index: {}]   ;;  %s1882_s1 = inlined_call_operand.hbm [shape: f32[4,256,128], index: 1, kind: input, shape index: {}]   ;;  %s1883_s2 = inlined_call_operand.vmem [shape: f32[1,128], index: 2, kind: input, shape index: {}]   ;;  %s1884_s3 = inlined_call_operand.hbm [shape: f32[128,256], index: 3, kind: input, shape index: {}]   ;;  %s1885_s4 = inlined_call_operand.hbm [shape: f32[11,512], index: 4, kind: output, shape index: {}]  }
   0x1   :  { %1891 = sst [smem:[#allocation13_spill]] %s1882_s1 }
   0x2   :  { %9 = vsyncpa [#allocation4], 0 }
   0x3   :  { %11 = vsyncpa [#allocation4 + $0x1], 0 }
   0x4   :  { %12 = vsyncpa [#allocation7], 0 }
   0x5   :  { %13 = vsyncpa [#allocation5], 0 }
   0x6   :  { %15 = vsyncpa [#allocation5 + $0x1], 0  ;;  %s1609_s15 = smov 0   ;;  %s1611_s16 = smov 0  }
   0x7   :  { %s1613_s17 = smov 0   ;;  %s1615_s18 = smov 0  }
   0x8 LB: > { %s1630_s19 = sadd.s32 4294967295, %s1568_s18   ;;  %s982_s20 = sadd.s32 4294967294, %s1568_s18   ;;  %s1568_s18 = sphi %s1615_s18, %s1913_s18   ;;  %s1564_s17 = sphi %s1613_s17, %s1912_s17   ;;  %s1560_s16 = sphi %s1611_s16, %s1911_s16   ;;  %s1556_s15 = sphi %s1609_s15, %s1910_s15  }
   0x9   : > { %s1634_s21 = sadd.s32 1, %s1568_s18   ;;  %s28_s22 = sadd.s32 1, %s1564_s17 }
   0xa   : > { %s25_s23 = ssub.s32 %s1568_s18, %s1634_s21  ;;  %p35_p0 = scmp.ne.s32.totalorder %s1564_s17, %s1560_s16 }
   0xb   : > { %p26_p1 = scmp.eq.s32.totalorder %s25_s23, 0  ;;  %p36_p2 = scmp.eq.s32.totalorder %s1568_s18, 0 }
   0xc   : > { %p41_p3 = scmp.ne.s32.totalorder %s1560_s16, %s1556_s15  ;;  %p1886_p4 = scmp.eq.s32.totalorder %s1630_s19, 0 }
   0xd   : > { %s1646_s24 = scalar_select %p26_p1, %s1564_s17, %s28_s22  }
   0xe   : > { %p1648_p5 = por %p36_p2, %p35_p0  ;;  %p1654_p6 = por %p1886_p4, %p41_p3 }
   0xf   : > { %p128_p7 = scmp.eq.s32.totalorder %s1630_s19, 1  ;;  %p134_p8 = scmp.eq.s32.totalorder %s982_s20, 1 }
  0x10   : > { %s1892_s25 = scalar_select %p1648_p5, 1, 0 }
  0x11   : > { %s1893_s26 = scalar_select %p1654_p6, 1, 0 }
  0x12   : > { %p983_p9 = scmp.ge.s32.totalorder %s1568_s18, 1  ;;  %p141_p10 = scmp.lt.s32.totalorder %s1568_s18, 3 }
  0x13   : > { %p1661_p11 = por %p128_p7, %p35_p0  ;;  %p1665_p12 = por %p134_p8, %p41_p3 }
  0x14   : > { %p1669_p13 = pnand %p983_p9, %p141_p10  ;;  %s1570_s30 = smov [#allocation6]  }
  0x15   : > { %s1894_s27 = scalar_select %p1661_p11, 1, 0 }
  0x16   : > { %s1895_s28 = scalar_select %p1665_p12, 1, 0 }
  0x17   : > { %s1896_s29 = scalar_select %p1669_p13, 1, 0 }
  0x18   : > { %p1347_p1 = pneg %p1669_p13  ;;  %s153_s5 = sshll.u32 %s1570_s30, 4  ;;  %s154_s5 = int_to_ptr.vmem [resolvable:$true] %s153_s5 }
  0x19   : > { %s1571_s7 = smov [#allocation8]   ;;  %s1898_s1 = sld [smem:[#allocation13_spill]] }
  0x1a   : > { %p1677_p2 = pnand %p1347_p1, %p1886_p4  ;;  %s169_s8 = sshll.u32 %s1571_s7, 4  ;;  %s170_s8 = int_to_ptr.vmem [resolvable:$true] %s169_s8 }
  0x1c   : > { %p1414_p8 = pneg %p1677_p2 }
  0x1f   : > { %s1412_s11 = scalar_lea.hbm %s1898_s1, 16384 }
  0x20   : > { %p1413_p7 = scmp.ne.s32.totalorder %s1898_s1, %s1412_s11  ;;  %p1419_p1 = scmp.lt.u32.totalorder %s1412_s11, %s1898_s1 }
  0x22   : > { %p1415_p9 = pnand %p1414_p8, %p1413_p7 }
  0x24   : > { %p1416_p10 = pneg %p1415_p9 }
  0x26   : > { %p1421_p0 = pnand %p1419_p1, %p1416_p10 }
  0x28   : > { %1424 = shalt.err (!%p1421_p0)
}
  0x29   : > { %s1425_s22 = scalar_lea.vmem %s154_s5, 16384  ;;  %p1433_p11 = scmp.lt.s32.totalorder %s154_s5, %s154_s5 }
  0x2a   : > { %p1426_p4 = scmp.ne.s32.totalorder %s154_s5, %s1425_s22  ;;  %p1434_p6 = scmp.lt.s32.totalorder %s1425_s22, %s1425_s22 }
  0x2c   : > { %p1428_p3 = pnand %p1426_p4, %p1414_p8  ;;  %p1435_p13 = por %p1434_p6, %p1433_p11 }
  0x2e   : > { %p1429_p12 = pneg %p1428_p3 }
  0x30   : > { %p1436_p5 = pnand %p1435_p13, %p1429_p12 }
  0x32   : > { %1439 = shalt.err (!%p1436_p5)
}
  0x33   : > { %s1572_s23 = smov 128   ;;  %s1573_s30 = smov 8  }
  0x34   : > { %1350 = dma.hbm_to_vmem [thread:$0]  (!%p1677_p2), %s1898_s1, 16384, %s154_s5, [#allocation7], %s1572_s23, %s1572_s23, %s1573_s30  }
  0x35   : > { %p1899_p0 = scmp.ne.s32.totalorder %s1892_s25, 0  ;;  %p1900_p4 = scmp.lt.s32.totalorder %s1568_s18, 2 }
  0x36   : > { %s183_s11 = sand.u32 1, %s1564_s17   ;;  %s1440_s14 = scalar_lea.hbm %s1884_s3, 4096 }
  0x37   : > { %p1709_p3 = pnand %p1900_p4, %p1899_p0  ;;  %p1441_p5 = scmp.ne.s32.totalorder %s1884_s3, %s1440_s14 }
  0x38   : > { %p1447_p12 = scmp.lt.u32.totalorder %s1440_s14, %s1884_s3 }
  0x39   : > { %s1901_s10 = scalar_select %p1709_p3, 1, 0 }
  0x3a   : > { %p1443_p6 = pnand %p1441_p5, %p1414_p8 }
  0x3c   : > { %p1444_p11 = pneg %p1443_p6 }
  0x3e   : > { %p1449_p13 = pnand %p1447_p12, %p1444_p11 }
  0x40   : > { %1452 = shalt.err (!%p1449_p13)
}
  0x41   : > { %s1453_s23 = scalar_lea.vmem %s170_s8, 4096  ;;  %p1461_p1 = scmp.lt.s32.totalorder %s170_s8, %s170_s8 }
  0x42   : > { %p1454_p7 = scmp.ne.s32.totalorder %s170_s8, %s1453_s23  ;;  %p1462_p0 = scmp.lt.s32.totalorder %s1453_s23, %s1453_s23 }
  0x44   : > { %p1456_p9 = pnand %p1454_p7, %p1414_p8  ;;  %p1463_p4 = por %p1462_p0, %p1461_p1 }
  0x46   : > { %p1457_p10 = pneg %p1456_p9 }
  0x48   : > { %p1464_p3 = pnand %p1463_p4, %p1457_p10 }
  0x4a   : > { %1467 = shalt.err (!%p1464_p3)
}
  0x4b   : > { %s1574_s30 = smov 256   ;;  %s1575_s7 = smov 16  }
  0x4c   : > { %1353 = dma.hbm_to_vmem [thread:$0]  (!%p1677_p2), %s1884_s3, 4096, %s170_s8, [#allocation7], %s1574_s30, %s1574_s30, %s1575_s7  }
  0x4d   : > { %s987_s13 = sshll.u32 %s183_s11, 5  ;;  %s1005_s14 = sshll.u32 %s1568_s18, 8 }
  0x4e   : > { %s1741_s25 = scalar_lea.hbm %s1881_s0, %s1005_s14  ;;  %s187_s5 = scalar_lea.vmem [#allocation3], %s987_s13 }
  0x4f   : > { %s194_s6 = sshll.u32 %s187_s5, 4  ;;  %s1745_s23 = scalar_lea.sflag [#allocation4], %s183_s11  ;;  %s1743_s6 = int_to_ptr.vmem [resolvable:$true] %s194_s6 }
  0x50   : > { %s1468_s1 = scalar_lea.hbm %s1741_s25, 512  ;;  %p1902_p2 = scmp.ne.s32.totalorder %s1901_s10, 0 }
  0x51   : > { %p1469_p8 = scmp.ne.s32.totalorder %s1741_s25, %s1468_s1  ;;  %s1473_s12 = scalar_lea.hbm %s1881_s0, 1024 }
  0x52   : > { %p1470_p3 = pneg %p1902_p2  ;;  %p1474_p11 = scmp.lt.u32.totalorder %s1741_s25, %s1881_s0 }
  0x53   : > { %p1475_p12 = scmp.lt.u32.totalorder %s1473_s12, %s1468_s1  ;;  %p1477_p7 = scmp.lt.u32.totalorder %s1468_s1, %s1741_s25 }
  0x54   : > { %p1471_p5 = pnand %p1470_p3, %p1469_p8 }
  0x55   : > { %p1476_p13 = por %p1475_p12, %p1474_p11 }
  0x56   : > { %p1472_p6 = pneg %p1471_p5 }
  0x57   : > { %p1478_p9 = por %p1477_p7, %p1476_p13 }
  0x59   : > { %p1479_p10 = pnand %p1478_p9, %p1472_p6 }
  0x5b   : > { %1482 = shalt.err (!%p1479_p10)
}
  0x5c   : > { %s1483_s11 = scalar_lea.vmem %s1743_s6, 512  ;;  %s1576_s13 = smov [#allocation3]  }
  0x5d   : > { %p1484_p1 = scmp.ne.s32.totalorder %s1743_s6, %s1483_s11  ;;  %s1488_s22 = sshll.u32 %s1576_s13, 4  ;;  %s1489_s22 = int_to_ptr.vmem [resolvable:$false] %s1488_s22 }
  0x5e   : > { %s1490_s5 = scalar_lea.vmem %s1489_s22, 1024  ;;  %p1491_p8 = scmp.lt.s32.totalorder %s1743_s6, %s1489_s22 }
  0x5f   : > { %p1486_p0 = pnand %p1484_p1, %p1470_p3  ;;  %p1492_p5 = scmp.lt.s32.totalorder %s1490_s5, %s1483_s11 }
  0x61   : > { %p1487_p4 = pneg %p1486_p0  ;;  %p1493_p11 = por %p1492_p5, %p1491_p8 }
  0x63   : > { %p1494_p12 = pnand %p1493_p11, %p1487_p4 }
  0x65   : > { %1497 = shalt.err (!%p1494_p12)
}
  0x66   : > { %s1577_s1 = smov 512   ;;  %p1903_p3 = scmp.ne.s32.totalorder %s1896_s29, 0 }
  0x67   : > { %1357 = dma.hbm_to_vmem [thread:$0]  (!%p1902_p2), %s1741_s25, 512, %s1743_s6, %s1745_s23, %s1577_s1, %s1574_s30, %s1575_s7  }
  0x68   : > { %206 = sbr.rel (%p1903_p3) target bundleno = 653 (0x28d), region = 36  ;;  %s1778_s8 = sand.u32 (!%p1903_p3), 1, %s1560_s16  }
  0x69   : > { %s991_s9 = sshll.u32 (!%p1903_p3), %s1778_s8, 5  ;;  %s209_s12 = scalar_lea.sflag (!%p1903_p3), [#allocation4], %s1778_s8 }
  0x6a   : > { %s1784_s10 = scalar_lea.vmem (!%p1903_p3), [#allocation3], %s991_s9  ;;  %p1904_p6 = scmp.ne.s32.totalorder (!%p1903_p3), %s1893_s26, 0 }
  0x6f   : > { %1543 = dma.done.wait (%p1904_p6), %s209_s12, 512  }
  0x70   : > { %1545 = vsyncadd (%p1904_p6), %s209_s12, 4294966784  ;;  %p1905_p2 = scmp.eq.s32.totalorder %s1630_s19, 0 }
  0x72   : > { %1547 = dma.done.wait (%p1905_p2), [#allocation7], 20480   ;;  %p1906_p13 = pmov %p1905_p2 }
  0x73   : > { %v269_v0 = vld [vmem:[#allocation6 + $0x180] sm:$0xff]  ;;  %v270_v1 = vld [vmem:[#allocation6 + $0x188] sm:$0xff]  ;;  %v271_v5 = vld [vmem:[#allocation6 + $0x190] sm:$0xff]  ;;  %vm520_vm0 = vcmask 1046528   ;;  %vm653_vm1 = vcmask 1045504   ;;  %s244_s30 = scalar_lea.vmem [#allocation9], %s991_s9 }
  0x74   : > { %1549 = vsyncadd (%p1906_p13), [#allocation7], 4294946816  ;;  %v253_v2 = vld [vmem:[#allocation6 + $0x100] sm:$0xff]  ;;  %v1159_v3 = vpack.c.bf16 %v270_v1, %v269_v0  ;;  %v254_v4 = vld [vmem:[#allocation6 + $0x108] sm:$0xff]  ;;  %s890_s7 = sshll.u32 %s244_s30, 4  ;;  %s1006_s25 = sshll.u32 %s1630_s19, 8  ;;  %s1832_s7 = int_to_ptr.vmem [resolvable:$true] %s890_s7 }
  0x75   : > { %v272_v6 = vld [vmem:[#allocation6 + $0x198] sm:$0xff]  ;;  %v1161_v7 = vpack.c.bf16 %v254_v4, %v253_v2  ;;  %v255_v9 = vld [vmem:[#allocation6 + $0x110] sm:$0xff]  ;;  %v273_v11 = vld [vmem:[#allocation6 + $0x1a0] sm:$0xff]  ;;  %s1837_s14 = scalar_lea.hbm %s1885_s4, %s1006_s25  ;;  %s877_s20 = scalar_lea.sflag [#allocation5], %s1778_s8 }
  0x76   : > { %v1163_v8 = vpack.c.bf16 %v272_v6, %v271_v5  ;;  %v256_v10 = vld [vmem:[#allocation6 + $0x118] sm:$0xff]  ;;  %1160 = vmatprep.subr.bf16.mxu0 %v1159_v3  ;;  %v274_v12 = vld [vmem:[#allocation6 + $0x1a8] sm:$0xff]  ;;  %v382_v13 = vld [vmem:[#allocation6 + $0x80] sm:$0xff]  ;;  %s1498_s11 = scalar_lea.vmem %s1832_s7, 512  ;;  %p1907_p9 = scmp.ne.s32.totalorder %s1894_s27, 0 }
  0x77   : > { %v383_v14 = vld [vmem:[#allocation6 + $0x88] sm:$0xff]  ;;  %1162 = vmatpush3.bf16.msra.mxu0 %v1161_v7  ;;  %v1165_v15 = vpack.c.bf16 %v256_v10, %v255_v9  ;;  %v257_v17 = vld [vmem:[#allocation6 + $0x120] sm:$0xff]  ;;  %v1167_v19 = vpack.c.bf16 %v274_v12, %v273_v11  ;;  %v275_v22 = vld [vmem:[#allocation6 + $0x1b0] sm:$0xff]  ;;  %p1499_p7 = scmp.ne.s32.totalorder %s1832_s7, %s1498_s11  ;;  %s1580_s19 = smov [#allocation9]  }
  0x78   : > { %v1191_v16 = vpack.c.bf16 %v383_v14, %v382_v13  ;;  %v366_v18 = vld [vmem:[#allocation6] sm:$0xff]  ;;  %1164 = vmatprep.subr.bf16.mxu0 %v1163_v8  ;;  %v258_v20 = vld [vmem:[#allocation6 + $0x128] sm:$0xff]  ;;  %v276_v24 = vld [vmem:[#allocation6 + $0x1b8] sm:$0xff]  ;;  %s1502_s13 = sshll.u32 %s1580_s19, 4  ;;  %s1503_s13 = int_to_ptr.vmem [resolvable:$false] %s1502_s13 }
  0x79   : > { %v367_v21 = vld [vmem:[#allocation6 + $0x8] sm:$0xff]  ;;  %v384_v25 = vld [vmem:[#allocation6 + $0x90] sm:$0xff]  ;;  %v385_v26 = vld [vmem:[#allocation6 + $0x98] sm:$0xff]  ;;  %v1169_v30 = vpack.c.bf16 %v258_v20, %v257_v17  ;;  %v1171_v34 = vpack.c.bf16 %v276_v24, %v275_v22  ;;  %p1500_p10 = pnand %p1499_p7, %p1907_p9  ;;  %s1504_s22 = scalar_lea.vmem %s1503_s13, 1024 }
  0x7a   : > { %1192 = vmatprep.subr.bf16.mxu1 %v1191_v16  ;;  %v1193_v23 = vpack.c.bf16 %v367_v21, %v366_v18  ;;  %v1195_v27 = vpack.c.bf16 %v385_v26, %v384_v25  ;;  %v368_v28 = vld [vmem:[#allocation6 + $0x10] sm:$0xff]  ;;  %v369_v29 = vld [vmem:[#allocation6 + $0x18] sm:$0xff]  ;;  %v386_v33 = vld [vmem:[#allocation6 + $0xa0] sm:$0xff]  ;;  %p1505_p0 = scmp.lt.s32.totalorder %s1832_s7, %s1503_s13  ;;  %p1506_p4 = scmp.lt.s32.totalorder %s1504_s22, %s1498_s11 }
  0x7b   : > { %1166 = vmatpush3.bf16.msra.mxu0 %v1165_v15  ;;  %v259_v31 = vld [vmem:[#allocation6 + $0x130] sm:$0xff]  ;;  %v1197_v32 = vpack.c.bf16 %v369_v29, %v368_v28  ;;  %v260_v35 = vld [vmem:[#allocation6 + $0x138] sm:$0xff]  ;;  %v277_v36 = vld [vmem:[#allocation6 + $0x1c0] sm:$0xff]  ;;  %p1501_p1 = pneg %p1500_p10 }
  0x7c   : > { %1194 = vmatpush3.bf16.msra.mxu1 %v1193_v23  ;;  %1168 = vmatprep.subr.bf16.mxu0 %v1167_v19  ;;  %v387_v37 = vld [vmem:[#allocation6 + $0xa8] sm:$0xff]  ;;  %v370_v40 = vld [vmem:[#allocation6 + $0x20] sm:$0xff]  ;;  %v388_v42 = vld [vmem:[#allocation6 + $0xb0] sm:$0xff]  ;;  %v1173_v44 = vpack.c.bf16 %v260_v35, %v259_v31  ;;  %p1507_p8 = por %p1506_p4, %p1505_p0 }
  0x7d   : > { %1196 = vmatprep.subr.bf16.mxu1 %v1195_v27  ;;  %v278_v38 = vld [vmem:[#allocation6 + $0x1c8] sm:$0xff]  ;;  %v1199_v39 = vpack.c.bf16 %v387_v37, %v386_v33  ;;  %v389_v43 = vld [vmem:[#allocation6 + $0xb8] sm:$0xff]  ;;  %v261_v45 = vld [vmem:[#allocation6 + $0x140] sm:$0xff] }
  0x7e   : > { %v371_v41 = vld [vmem:[#allocation6 + $0x28] sm:$0xff]  ;;  %v1175_v48 = vpack.c.bf16 %v278_v38, %v277_v36  ;;  %v279_v49 = vld [vmem:[#allocation6 + $0x1d0] sm:$0xff]  ;;  %v1203_v50 = vpack.c.bf16 %v389_v43, %v388_v42  ;;  %v373_v52 = vld [vmem:[#allocation6 + $0x38] sm:$0xff]  ;;  %p1508_p5 = pnand %p1507_p8, %p1501_p1 }
  0x7f   : > { %1170 = vmatpush3.bf16.msra.mxu0 %v1169_v30  ;;  %v262_v46 = vld [vmem:[#allocation6 + $0x148] sm:$0xff]  ;;  %v1201_v47 = vpack.c.bf16 %v371_v41, %v370_v40  ;;  %v372_v51 = vld [vmem:[#allocation6 + $0x30] sm:$0xff]  ;;  %v280_v53 = vld [vmem:[#allocation6 + $0x1d8] sm:$0xff] }
  0x80   : > { %1198 = vmatpush3.bf16.msra.mxu1 %v1197_v32  ;;  %1172 = vmatprep.subr.bf16.mxu0 %v1171_v34  ;;  %v390_v54 = vld [vmem:[#allocation6 + $0xc0] sm:$0xff]  ;;  %v391_v55 = vld [vmem:[#allocation6 + $0xc8] sm:$0xff]  ;;  %v1177_v56 = vpack.c.bf16 %v262_v46, %v261_v45  ;;  %v263_v57 = vld [vmem:[#allocation6 + $0x150] sm:$0xff]  ;;  %v1205_v59 = vpack.c.bf16 %v373_v52, %v372_v51  ;;  %v1179_v61 = vpack.c.bf16 %v280_v53, %v279_v49 }
  0x81   : > { %1200 = vmatprep.subr.bf16.mxu1 %v1199_v39  ;;  %v264_v58 = vld [vmem:[#allocation6 + $0x158] sm:$0xff]  ;;  %v281_v60 = vld [vmem:[#allocation6 + $0x1e0] sm:$0xff]  ;;  %v282_v62 = vld [vmem:[#allocation6 + $0x1e8] sm:$0xff]  ;;  %v1207_v63 = vpack.c.bf16 %v391_v55, %v390_v54 }
  0x82   : > { %v374_v0 = vld [vmem:[#allocation6 + $0x40] sm:$0xff]  ;;  %v375_v1 = vld [vmem:[#allocation6 + $0x48] sm:$0xff]  ;;  %v392_v2 = vld [vmem:[#allocation6 + $0xd0] sm:$0xff]  ;;  %v1181_v5 = vpack.c.bf16 %v264_v58, %v263_v57  ;;  %v1183_v9 = vpack.c.bf16 %v282_v62, %v281_v60 }
  0x83   : > { %1174 = vmatpush3.bf16.msra.mxu0 %v1173_v44  ;;  %v393_v3 = vld [vmem:[#allocation6 + $0xd8] sm:$0xff]  ;;  %v249_v4 = vld [vmem:[%s1784_s10 + $0x8] sm:$0xff]  ;;  %v265_v6 = vld [vmem:[#allocation6 + $0x160] sm:$0xff]  ;;  %v1209_v8 = vpack.c.bf16 %v375_v1, %v374_v0 }
  0x84   : > { %1202 = vmatpush3.bf16.msra.mxu1 %v1201_v47  ;;  %1176 = vmatprep.subr.bf16.mxu0 %v1175_v48  ;;  %v266_v7 = vld [vmem:[#allocation6 + $0x168] sm:$0xff]  ;;  %v283_v10 = vld [vmem:[#allocation6 + $0x1f0] sm:$0xff]  ;;  %v1211_v11 = vpack.c.bf16 %v393_v3, %v392_v2  ;;  %v377_v13 = vld [vmem:[#allocation6 + $0x58] sm:$0xff] }
  0x85   : > { %1204 = vmatprep.subr.bf16.mxu1 %v1203_v50  ;;  %349 = vmatprep.mubr.f32.mxu0 %v249_v4  ;;  %v376_v12 = vld [vmem:[#allocation6 + $0x50] sm:$0xff]  ;;  %v284_v14 = vld [vmem:[#allocation6 + $0x1f8] sm:$0xff]  ;;  %v394_v15 = vld [vmem:[#allocation6 + $0xe0] sm:$0xff]  ;;  %v1185_v17 = vpack.c.bf16 %v266_v7, %v265_v6 }
  0x86   : > { %462 = vmatprep.mubr.f32.mxu1 %v249_v4  ;;  %v395_v16 = vld [vmem:[#allocation6 + $0xe8] sm:$0xff]  ;;  %v267_v18 = vld [vmem:[#allocation6 + $0x170] sm:$0xff]  ;;  %v268_v19 = vld [vmem:[#allocation6 + $0x178] sm:$0xff]  ;;  %v1213_v20 = vpack.c.bf16 %v377_v13, %v376_v12  ;;  %v1187_v21 = vpack.c.bf16 %v284_v14, %v283_v10 }
  0x87   : > { %1178 = vmatpush3.bf16.msra.mxu0 %v1177_v56  ;;  %v1215_v22 = vpack.c.bf16 %v395_v16, %v394_v15  ;;  %v500_v23 = vld [vmem:[#allocation6 + $0x280] sm:$0xff]  ;;  %v379_v25 = vld [vmem:[#allocation6 + $0x68] sm:$0xff]  ;;  %v396_v27 = vld [vmem:[#allocation6 + $0xf0] sm:$0xff]  ;;  %v1189_v29 = vpack.c.bf16 %v268_v19, %v267_v18 }
  0x88   : > { %1206 = vmatpush3.bf16.msra.mxu1 %v1205_v59  ;;  %1180 = vmatprep.subr.bf16.mxu0 %v1179_v61  ;;  %v378_v24 = vld [vmem:[#allocation6 + $0x60] sm:$0xff]  ;;  %v501_v26 = vld [vmem:[#allocation6 + $0x288] sm:$0xff]  ;;  %v397_v28 = vld [vmem:[#allocation6 + $0xf8] sm:$0xff] }
  0x89   : > { %1208 = vmatprep.subr.bf16.mxu1 %v1207_v63  ;;  %v1217_v30 = vpack.c.bf16 %v379_v25, %v378_v24  ;;  %v1223_v31 = vpack.c.bf16 %v501_v26, %v500_v23  ;;  %v484_v32 = vld [vmem:[#allocation6 + $0x200] sm:$0xff]  ;;  %v485_v33 = vld [vmem:[#allocation6 + $0x208] sm:$0xff]  ;;  %v1219_v34 = vpack.c.bf16 %v397_v28, %v396_v27  ;;  %v502_v35 = vld [vmem:[#allocation6 + $0x290] sm:$0xff] }
  0x8a   : > { %v503_v36 = vld [vmem:[#allocation6 + $0x298] sm:$0xff]  ;;  %v380_v37 = vld [vmem:[#allocation6 + $0x70] sm:$0xff]  ;;  %v633_v39 = vld [vmem:[#allocation6 + $0x380] sm:$0xff]  ;;  %v1225_v42 = vpack.c.bf16 %v485_v33, %v484_v32 }
  0x8b   : > { %1182 = vmatpush3.bf16.msra.mxu0 %v1181_v5  ;;  %v381_v38 = vld [vmem:[#allocation6 + $0x78] sm:$0xff]  ;;  %v634_v40 = vld [vmem:[#allocation6 + $0x388] sm:$0xff]  ;;  %v248_v41 = vld [vmem:[%s1784_s10] sm:$0xff]  ;;  %v1227_v44 = vpack.c.bf16 %v503_v36, %v502_v35 }
  0x8c   : > { %1210 = vmatpush3.bf16.msra.mxu1 %v1209_v8  ;;  %1184 = vmatprep.subr.bf16.mxu0 %v1183_v9  ;;  %v251_v43 = vld [vmem:[%s1784_s10 + $0x18] sm:$0x7]  ;;  %v1221_v45 = vpack.c.bf16 %v381_v38, %v380_v37  ;;  %v486_v46 = vld [vmem:[#allocation6 + $0x210] sm:$0xff]  ;;  %v504_v48 = vld [vmem:[#allocation6 + $0x2a0] sm:$0xff]  ;;  %v1255_v50 = vpack.c.bf16 %v634_v40, %v633_v39 }
  0x8d   : > { %1212 = vmatprep.subr.bf16.mxu1 %v1211_v11  ;;  %v487_v47 = vld [vmem:[#allocation6 + $0x218] sm:$0xff]  ;;  %v505_v49 = vld [vmem:[#allocation6 + $0x2a8] sm:$0xff]  ;;  %v617_v51 = vld [vmem:[#allocation6 + $0x300] sm:$0xff] }
  0x8e   : > { %v618_v52 = vld [vmem:[#allocation6 + $0x308] sm:$0xff]  ;;  %v635_v53 = vld [vmem:[#allocation6 + $0x390] sm:$0xff]  ;;  %v636_v54 = vld [vmem:[#allocation6 + $0x398] sm:$0xff]  ;;  %v1229_v56 = vpack.c.bf16 %v487_v47, %v486_v46  ;;  %v1231_v57 = vpack.c.bf16 %v505_v49, %v504_v48 }
  0x8f   : > { %1186 = vmatpush3.bf16.msra.mxu0 %v1185_v17  ;;  %v250_v55 = vld [vmem:[%s1784_s10 + $0x10] sm:$0x7]  ;;  %v488_v58 = vld [vmem:[#allocation6 + $0x220] sm:$0xff]  ;;  %v489_v59 = vld [vmem:[#allocation6 + $0x228] sm:$0xff]  ;;  %v1257_v60 = vpack.c.bf16 %v618_v52, %v617_v51  ;;  %v1259_v63 = vpack.c.bf16 %v636_v54, %v635_v53 }
  0x90   : > { %1214 = vmatpush3.bf16.msra.mxu1 %v1213_v20  ;;  %1188 = vmatprep.subr.bf16.mxu0 %v1187_v21  ;;  %v506_v61 = vld [vmem:[#allocation6 + $0x2b0] sm:$0xff]  ;;  %v507_v62 = vld [vmem:[#allocation6 + $0x2b8] sm:$0xff]  ;;  %v637_v3 = vld [vmem:[#allocation6 + $0x3a0] sm:$0xff]  ;;  %v1233_v5 = vpack.c.bf16 %v489_v59, %v488_v58 }
  0x91   : > { %1216 = vmatprep.subr.bf16.mxu1 %v1215_v22  ;;  %v619_v0 = vld [vmem:[#allocation6 + $0x310] sm:$0xff]  ;;  %v620_v1 = vld [vmem:[#allocation6 + $0x318] sm:$0xff]  ;;  %v638_v4 = vld [vmem:[#allocation6 + $0x3a8] sm:$0xff]  ;;  %v1235_v9 = vpack.c.bf16 %v507_v62, %v506_v61 }
  0x92   : > { %v365_v2 = vld [vmem:[%s1784_s10 + $0x18] sm:$0x3]  ;;  %v364_v6 = vld [vmem:[%s1784_s10 + $0x10] sm:$0x3]  ;;  %v1261_v10 = vpack.c.bf16 %v620_v1, %v619_v0  ;;  %v508_v11 = vld [vmem:[#allocation6 + $0x2c0] sm:$0xff]  ;;  %v1263_v14 = vpack.c.bf16 %v638_v4, %v637_v3 }
  0x93   : > { %1190 = vmatpush3.bf16.msra.mxu0 %v1189_v29  ;;  %v490_v7 = vld [vmem:[#allocation6 + $0x230] sm:$0xff]  ;;  %v491_v8 = vld [vmem:[#allocation6 + $0x238] sm:$0xff]  ;;  %v509_v12 = vld [vmem:[#allocation6 + $0x2c8] sm:$0xff] }
  0x94   : > { %1218 = vmatpush3.bf16.msra.mxu1 %v1217_v30  ;;  %1224 = vmatprep.subr.bf16.mxu0 %v1223_v31  ;;  %v621_v13 = vld [vmem:[#allocation6 + $0x320] sm:$0xff]  ;;  %v622_v15 = vld [vmem:[#allocation6 + $0x328] sm:$0xff]  ;;  %v1802_v17 = vld [vmem:[%s1784_s10 + $0x18] sm:$0xf]  ;;  %v1237_v22 = vpack.c.bf16 %v491_v8, %v490_v7  ;;  %v1239_v25 = vpack.c.bf16 %v509_v12, %v508_v11 }
  0x95   : > { %1220 = vmatprep.subr.bf16.mxu1 %v1219_v34  ;;  %v480_v16 = vld [vmem:[%s1784_s10 + $0x8] sm:$0xfe]  ;;  %v639_v18 = vld [vmem:[#allocation6 + $0x3b0] sm:$0xff]  ;;  %v640_v19 = vld [vmem:[#allocation6 + $0x3b8] sm:$0xff]  ;;  %v525_v21 = vrot.slane %v1802_v17, 1  ;;  %v1265_v26 = vpack.c.bf16 %v622_v15, %v621_v13 }
  0x96   : > { %350 = vmatmul.mubr.f32.vlgmr.msra.gmra.mrb[0].mxu0 %v248_v41  ;;  %v524_v20 = vrot.slane %v480_v16, 1  ;;  %v492_v23 = vld [vmem:[#allocation6 + $0x240] sm:$0xff]  ;;  %v493_v24 = vld [vmem:[#allocation6 + $0x248] sm:$0xff]  ;;  %v510_v27 = vld [vmem:[#allocation6 + $0x2d0] sm:$0xff]  ;;  %v1267_v31 = vpack.c.bf16 %v640_v19, %v639_v18 }
  0x97   : > { %1226 = vmatpush3.bf16.msra.mxu0 %v1225_v42  ;;  %354 = vmatprep.mubr.f32.mxu0 %v251_v43  ;;  %v511_v28 = vld [vmem:[#allocation6 + $0x2d8] sm:$0xff]  ;;  %v623_v29 = vld [vmem:[#allocation6 + $0x330] sm:$0xff]  ;;  %v613_v33 = vld [vmem:[%s1784_s10 + $0x8] sm:$0xfc]  ;;  %v1241_v39 = vpack.c.bf16 %v493_v24, %v492_v23 }
  0x98   : > { %1228 = vmatprep.subr.bf16.mxu0 %v1227_v44  ;;  %1222 = vmatpush3.bf16.msra.mxu1 %v1221_v45  ;;  %v526_v30 = vsel %vm520_vm0, %v524_v20, %v525_v21  ;;  %v624_v32 = vld [vmem:[#allocation6 + $0x338] sm:$0xff]  ;;  %v641_v35 = vld [vmem:[#allocation6 + $0x3c0] sm:$0xff]  ;;  %v642_v36 = vld [vmem:[#allocation6 + $0x3c8] sm:$0xff]  ;;  %v657_v37 = vrot.slane %v613_v33, 2  ;;  %v1243_v40 = vpack.c.bf16 %v511_v28, %v510_v27 }
  0x99   : > { %1256 = vmatprep.subr.bf16.mxu1 %v1255_v50  ;;  %v1810_v34 = vld [vmem:[%s1784_s10 + $0x18] sm:$0xf]  ;;  %v1269_v43 = vpack.c.bf16 %v624_v32, %v623_v29  ;;  %v512_v44 = vld [vmem:[#allocation6 + $0x2e0] sm:$0xff]  ;;  %v513_v46 = vld [vmem:[#allocation6 + $0x2e8] sm:$0xff]  ;;  %v1271_v47 = vpack.c.bf16 %v642_v36, %v641_v35 }
  0x9a   : > { %355 = vmatmul.mubr.f32.gmra.mrb[2].mxu0 %v250_v55  ;;  %v658_v38 = vrot.slane %v1810_v34, 2  ;;  %v495_v42 = vld [vmem:[#allocation6 + $0x258] sm:$0xff]  ;;  %v625_v48 = vld [vmem:[#allocation6 + $0x340] sm:$0xff]  ;;  %v626_v49 = vld [vmem:[#allocation6 + $0x348] sm:$0xff]  ;;  %v1247_v53 = vpack.c.bf16 %v513_v46, %v512_v44 }
  0x9b   : > { %1230 = vmatpush3.bf16.msra.mxu0 %v1229_v56  ;;  %463 = vmatmul.mubr.f32.vlgmr.msra.gmra.mrb[0].mxu1 %v248_v41  ;;  %v494_v41 = vld [vmem:[#allocation6 + $0x250] sm:$0xff]  ;;  %v644_v51 = vld [vmem:[#allocation6 + $0x3d8] sm:$0xff]  ;;  %v496_v54 = vld [vmem:[#allocation6 + $0x260] sm:$0xff]  ;;  %v1273_v56 = vpack.c.bf16 %v626_v49, %v625_v48 }
  0x9c   : > { %1232 = vmatprep.subr.bf16.mxu0 %v1231_v57  ;;  %1258 = vmatpush3.bf16.msra.mxu1 %v1257_v60  ;;  %v659_v45 = vsel %vm653_vm1, %v657_v37, %v658_v38  ;;  %v643_v50 = vld [vmem:[#allocation6 + $0x3d0] sm:$0xff]  ;;  %v1245_v52 = vpack.c.bf16 %v495_v42, %v494_v41  ;;  %v497_v55 = vld [vmem:[#allocation6 + $0x268] sm:$0xff]  ;;  %v515_v58 = vld [vmem:[#allocation6 + $0x2f8] sm:$0xff] }
  0x9d   : > { %467 = vmatprep.mubr.f32.mxu1 %v365_v2  ;;  %1260 = vmatprep.subr.bf16.mxu1 %v1259_v63  ;;  %v514_v57 = vld [vmem:[#allocation6 + $0x2f0] sm:$0xff]  ;;  %v1275_v59 = vpack.c.bf16 %v644_v51, %v643_v50  ;;  %v628_v61 = vld [vmem:[#allocation6 + $0x358] sm:$0xff]  ;;  %v645_v62 = vld [vmem:[#allocation6 + $0x3e0] sm:$0xff]  ;;  %v1249_v0 = vpack.c.bf16 %v497_v55, %v496_v54 }
  0x9e   : > { %595 = vmatprep.mubr.f32.mxu0 %v526_v30  ;;  %v627_v60 = vld [vmem:[#allocation6 + $0x350] sm:$0xff]  ;;  %v646_v63 = vld [vmem:[#allocation6 + $0x3e8] sm:$0xff]  ;;  %v1251_v2 = vpack.c.bf16 %v515_v58, %v514_v57  ;;  %v499_v3 = vld [vmem:[#allocation6 + $0x278] sm:$0xff] }
  0x9f   : > { %1234 = vmatpush3.bf16.msra.mxu0 %v1233_v5  ;;  %468 = vmatmul.mubr.f32.gmra.mrb[2].mxu1 %v364_v6  ;;  %v498_v1 = vld [vmem:[#allocation6 + $0x270] sm:$0xff]  ;;  %v1277_v4 = vpack.c.bf16 %v628_v61, %v627_v60  ;;  %v479_v5 = vld [vmem:[%s1784_s10] sm:$0xfe]  ;;  %v1279_v7 = vpack.c.bf16 %v646_v63, %v645_v62  ;;  %v648_v11 = vld [vmem:[#allocation6 + $0x3f8] sm:$0xff] }
  0xa0   : > { %1236 = vmatprep.subr.bf16.mxu0 %v1235_v9  ;;  %1262 = vmatpush3.bf16.msra.mxu1 %v1261_v10  ;;  %v481_v6 = vld [vmem:[%s1784_s10 + $0x10] sm:$0xf]  ;;  %v629_v8 = vld [vmem:[#allocation6 + $0x360] sm:$0xff]  ;;  %v630_v9 = vld [vmem:[#allocation6 + $0x368] sm:$0xff]  ;;  %v1253_v12 = vpack.c.bf16 %v499_v3, %v498_v1  ;;  %v521_v13 = vrot.slane %v479_v5, 1 }
  0xa1   : > { %1264 = vmatprep.subr.bf16.mxu1 %v1263_v14  ;;  %728 = vmatprep.mubr.f32.mxu1 %v659_v45  ;;  %v647_v10 = vld [vmem:[#allocation6 + $0x3f0] sm:$0xff]  ;;  %v522_v14 = vrot.slane %v481_v6, 1  ;;  %v1281_v15 = vpack.c.bf16 %v630_v9, %v629_v8  ;;  %v632_v19 = vld [vmem:[#allocation6 + $0x378] sm:$0xff]  ;;  %v612_v20 = vld [vmem:[%s1784_s10] sm:$0xfc] }
  0xa2   : > { %v631_v16 = vld [vmem:[#allocation6 + $0x370] sm:$0xff]  ;;  %v1283_v18 = vpack.c.bf16 %v648_v11, %v647_v10  ;;  %v760_v28 = vld [vmem:[#allocation8 + $0x8] sm:$0xff]  ;;  %v762_v29 = vld [vmem:[#allocation8 + $0x18] sm:$0xff]  ;;  %v1578_v10 = vmov 0.0  }
  0xa3   : > { %1238 = vmatpush3.bf16.msra.mxu0 %v1237_v22  ;;  %v614_v22 = vld [vmem:[%s1784_s10 + $0x10] sm:$0xf]  ;;  %v523_v23 = vsel %vm520_vm0, %v521_v13, %v522_v14  ;;  %v1285_v24 = vpack.c.bf16 %v632_v19, %v631_v16  ;;  %v1287_v30 = vpack.c.bf16 %v762_v29, %v760_v28  ;;  %v764_v17 = vld [vmem:[#allocation8 + $0x28] sm:$0xff]  ;;  %v763_v36 = vld [vmem:[#allocation8 + $0x20] sm:$0xff] }
  0xa4   : > { %1240 = vmatprep.subr.bf16.mxu0 %v1239_v25  ;;  %1266 = vmatpush3.bf16.msra.mxu1 %v1265_v26  ;;  %v654_v25 = vrot.slane %v612_v20, 2  ;;  %v655_v26 = vrot.slane %v614_v22, 2  ;;  %v761_v32 = vld [vmem:[#allocation8 + $0x10] sm:$0xff]  ;;  %v768_v34 = vld [vmem:[#allocation8 + $0x48] sm:$0xff]  ;;  %v767_v41 = vld [vmem:[#allocation8 + $0x40] sm:$0xff] }
  0xa5   : > { %1268 = vmatprep.subr.bf16.mxu1 %v1267_v31  ;;  %v759_v31 = vld [vmem:[#allocation8] sm:$0xff]  ;;  %v765_v37 = vld [vmem:[#allocation8 + $0x30] sm:$0xff]  ;;  %v772_v44 = vld [vmem:[#allocation8 + $0x68] sm:$0xff] }
  0xa6   : > { %v656_v27 = vsel %vm653_vm1, %v654_v25, %v655_v26  ;;  %v1289_v33 = vpack.c.bf16 %v761_v32, %v759_v31  ;;  %v769_v42 = vld [vmem:[#allocation8 + $0x50] sm:$0xff]  ;;  %v774_v45 = vld [vmem:[#allocation8 + $0x78] sm:$0xff]  ;;  %v776_v50 = vld [vmem:[#allocation8 + $0x88] sm:$0xff] }
  0xa7   : > { %1242 = vmatpush3.bf16.msra.mxu0 %v1241_v39  ;;  %v1293_v39 = vpack.c.bf16 %v765_v37, %v763_v36  ;;  %v1299_v46 = vpack.c.bf16 %v774_v45, %v772_v44  ;;  %v773_v48 = vld [vmem:[#allocation8 + $0x70] sm:$0xff]  ;;  %v778_v51 = vld [vmem:[#allocation8 + $0x98] sm:$0xff]  ;;  %v784_v62 = vld [vmem:[#allocation8 + $0xc8] sm:$0xff]  ;;  %v1579_v45 = vmov 1.0  }
  0xa8   : > { %1244 = vmatprep.subr.bf16.mxu0 %v1243_v40  ;;  %1270 = vmatpush3.bf16.msra.mxu1 %v1269_v43  ;;  %v1297_v43 = vpack.c.bf16 %v769_v42, %v767_v41  ;;  %v777_v54 = vld [vmem:[#allocation8 + $0x90] sm:$0xff]  ;;  %v782_v57 = vld [vmem:[#allocation8 + $0xb8] sm:$0xff]  ;;  %v783_v1 = vld [vmem:[#allocation8 + $0xc0] sm:$0xff] }
  0xa9   : > { %1272 = vmatprep.subr.bf16.mxu1 %v1271_v47  ;;  %v771_v47 = vld [vmem:[#allocation8 + $0x60] sm:$0xff]  ;;  %v781_v60 = vld [vmem:[#allocation8 + $0xb0] sm:$0xff]  ;;  %v786_v63 = vld [vmem:[#allocation8 + $0xd8] sm:$0xff] }
  0xaa   : > { %v1301_v49 = vpack.c.bf16 %v773_v48, %v771_v47  ;;  %v790_v5 = vld [vmem:[#allocation8 + $0xf8] sm:$0xff]  ;;  %v789_v8 = vld [vmem:[#allocation8 + $0xf0] sm:$0xff] }
  0xab   : > { %1246 = vmatpush3.bf16.msra.mxu0 %v1245_v52  ;;  %v1303_v52 = vpack.c.bf16 %v778_v51, %v776_v50 }
  0xac   : > { %1248 = vmatprep.subr.bf16.mxu0 %v1247_v53  ;;  %1274 = vmatpush3.bf16.msra.mxu1 %v1273_v56  ;;  %v775_v53 = vld [vmem:[#allocation8 + $0x80] sm:$0xff]  ;;  %v780_v56 = vld [vmem:[#allocation8 + $0xa8] sm:$0xff] }
  0xad   : > { %1276 = vmatprep.subr.bf16.mxu1 %v1275_v59  ;;  %v1305_v55 = vpack.c.bf16 %v777_v54, %v775_v53  ;;  %v1307_v58 = vpack.c.bf16 %v782_v57, %v780_v56  ;;  %v779_v59 = vld [vmem:[#allocation8 + $0xa0] sm:$0xff] }
  0xae   : > { %v1309_v61 = vpack.c.bf16 %v781_v60, %v779_v59 }
  0xaf   : > { %1250 = vmatpush3.bf16.msra.mxu0 %v1249_v0  ;;  %v1311_v0 = vpack.c.bf16 %v786_v63, %v784_v62 }
  0xb0   : > { %1252 = vmatprep.subr.bf16.mxu0 %v1251_v2  ;;  %1278 = vmatpush3.bf16.msra.mxu1 %v1277_v4  ;;  %v785_v2 = vld [vmem:[#allocation8 + $0xd0] sm:$0xff]  ;;  %v788_v4 = vld [vmem:[#allocation8 + $0xe8] sm:$0xff] }
  0xb1   : > { %1280 = vmatprep.subr.bf16.mxu1 %v1279_v7  ;;  %v1313_v3 = vpack.c.bf16 %v785_v2, %v783_v1  ;;  %v1315_v6 = vpack.c.bf16 %v790_v5, %v788_v4  ;;  %v787_v7 = vld [vmem:[#allocation8 + $0xe0] sm:$0xff] }
  0xb2   : > { %v1317_v9 = vpack.c.bf16 %v789_v8, %v787_v7 }
  0xb3   : > { %1254 = vmatpush3.bf16.msra.mxu0 %v1253_v12 }
  0xb4   : > { %1282 = vmatpush3.bf16.msra.mxu1 %v1281_v15  ;;  %1288 = vmatprep.subr.bf16.mxu0 %v1287_v30 }
  0xb5   : > { %1284 = vmatprep.subr.bf16.mxu1 %v1283_v18 }
  0xb6   : > { %596 = vmatmul.mubr.f32.vlgmr.msra.gmra.mrb[4].mxu0 %v523_v23 }
  0xb7   : > { %600 = vmatprep.mubr.f32.mxu0 %v525_v21  ;;  %1290 = vmatpush1.bf16.msra.mxu0 %v1289_v33  ;;  %v766_v21 = vld [vmem:[#allocation8 + $0x38] sm:$0xff] }
  0xb8   : > { %1286 = vmatpush3.bf16.msra.mxu1 %v1285_v24  ;;  %v1291_v35 = vpack.c.bf16 %v766_v21, %v764_v17 }
  0xb9   : > { %1319 = vmatprep.subr.bf16.mxu1 %v1287_v30 }
  0xba   : > { %601 = vmatmul.mubr.f32.gmra.mrb[6].mxu0 %v522_v14  ;;  %1292 = vmatprep.subr.bf16.mxu0 %v1291_v35 }
  0xbb   : > { %729 = vmatmul.mubr.f32.vlgmr.msra.gmra.mrb[4].mxu1 %v656_v27  ;;  %1294 = vmatpush1.bf16.msra.mxu0 %v1293_v39 }
  0xbc   : > { %733 = vmatprep.mubr.f32.mxu1 %v658_v38  ;;  %1327 = vmatpush1.bf16.msra.mxu1 %v1289_v33  ;;  %v770_v38 = vld [vmem:[#allocation8 + $0x58] sm:$0xff] }
  0xbd   : > { %1320 = vmatprep.subr.bf16.mxu1 %v1291_v35  ;;  %v1295_v40 = vpack.c.bf16 %v770_v38, %v768_v34  ;;  %855 = vmatprep.mubr.f32.mxu0 %v1578_v10 }
  0xbf   : > { %734 = vmatmul.mubr.f32.gmra.mrb[6].mxu1 %v655_v26  ;;  %1296 = vmatprep.subr.bf16.mxu0 %v1295_v40 }
  0xc0   : > { %1328 = vmatpush1.bf16.msra.mxu1 %v1293_v39  ;;  %1298 = vmatpush1.bf16.msra.mxu0 %v1297_v43 }
  0xc1   : > { %1321 = vmatprep.subr.bf16.mxu1 %v1295_v40  ;;  %1300 = vmatprep.subr.bf16.mxu0 %v1299_v46  ;;  %v995_v40 = vld [vmem:[%s1883_s2] ss:$0 sm:$0xff] }
  0xc2   : > { %861 = vmatprep.mubr.f32.mxu1 %v1578_v10 }
  0xc4   : > { %1329 = vmatpush1.bf16.msra.mxu1 %v1297_v43  ;;  %1302 = vmatpush1.bf16.msra.mxu0 %v1301_v49 }
  0xc5   : > { %1322 = vmatprep.subr.bf16.mxu1 %v1299_v46  ;;  %1304 = vmatprep.subr.bf16.mxu0 %v1303_v52 }
  0xc8   : > { %1330 = vmatpush1.bf16.msra.mxu1 %v1301_v49  ;;  %1306 = vmatpush1.bf16.msra.mxu0 %v1305_v55 }
  0xc9   : > { %1323 = vmatprep.subr.bf16.mxu1 %v1303_v52  ;;  %1308 = vmatprep.subr.bf16.mxu0 %v1307_v58 }
  0xcc   : > { %1331 = vmatpush1.bf16.msra.mxu1 %v1305_v55  ;;  %1310 = vmatpush1.bf16.msra.mxu0 %v1309_v61 }
  0xcd   : > { %1324 = vmatprep.subr.bf16.mxu1 %v1307_v58  ;;  %1312 = vmatprep.subr.bf16.mxu0 %v1311_v0 }
  0xd0   : > { %1332 = vmatpush1.bf16.msra.mxu1 %v1309_v61  ;;  %1314 = vmatpush1.bf16.msra.mxu0 %v1313_v3 }
  0xd1   : > { %1325 = vmatprep.subr.bf16.mxu1 %v1311_v0  ;;  %1316 = vmatprep.subr.bf16.mxu0 %v1315_v6 }
  0xd4   : > { %1333 = vmatpush1.bf16.msra.mxu1 %v1313_v3  ;;  %1318 = vmatpush1.bf16.msra.mxu0 %v1317_v9 }
  0xd5   : > { %1326 = vmatprep.subr.bf16.mxu1 %v1315_v6 }
  0xd8   : > { %1334 = vmatpush1.bf16.msra.mxu1 %v1317_v9 }
 0x169   : > { %v1039_v11 = vpop.f32.mrb[0].mxu0 }
 0x16a   : > { %v1040_v12 = vpop.f32.mrb[1].mxu0 }
 0x16b   : > { %v1041_v13 = vadd.f32 %v1040_v12, %v1039_v11 }
 0x16d   : > { %360 = vst [vmem:[#allocation2] sm:$0xff] %v1041_v13  ;;  %v1042_v14 = vpop.f32.mrb[2].mxu0 }
 0x16e   : > { %v1043_v15 = vpop.f32.mrb[3].mxu0  ;;  %v1077_v16 = vpop.f32.mrb[0].mxu1 }
 0x16f   : > { %v1044_v18 = vadd.f32 %v1043_v15, %v1042_v14  ;;  %v1078_v19 = vpop.f32.mrb[1].mxu1 }
 0x170   : > { %v1079_v20 = vadd.f32 %v1078_v19, %v1077_v16 }
 0x171   : > { %361 = vst [vmem:[#allocation2 + $0x8] sm:$0x7] %v1044_v18 }
 0x172   : > { %v1080_v22 = vpop.f32.mrb[2].mxu1 }
 0x173   : > { %v1081_v23 = vpop.f32.mrb[3].mxu1 }
 0x174   : > { %v1082_v24 = vadd.f32 %v1081_v23, %v1080_v22 }
 0x178   : > { %v473_v25 = vld [vmem:[#allocation2 + $0x1] sm:$0xff]  ;;  %v474_v26 = vld [vmem:[#allocation2 + $0x9] sm:$0x3] }
 0x179   : > { %v475_v27 = vadd.f32 %v1079_v20, %v473_v25  ;;  %v476_v28 = vadd.f32 %v1082_v24, %v474_v26 }
 0x17b   : > { %477 = vst [vmem:[#allocation2 + $0x1] sm:$0xff] %v475_v27  ;;  %478 = vst [vmem:[#allocation2 + $0x9] sm:$0x3] %v476_v28 }
 0x182   : > { %v606_v32 = vld [vmem:[#allocation2] sm:$0xff]  ;;  %v607_v39 = vld [vmem:[#allocation2 + $0x8] sm:$0x7] }
 0x189   : > { %v1115_v29 = vpop.f32.mrb[4].mxu0 }
 0x18a   : > { %v1116_v30 = vpop.f32.mrb[5].mxu0 }
 0x18b   : > { %v1117_v31 = vadd.f32 %v1116_v30, %v1115_v29 }
 0x18d   : > { %v1118_v33 = vpop.f32.mrb[6].mxu0  ;;  %v608_v17 = vadd.f32 %v1117_v31, %v606_v32 }
 0x18e   : > { %v1119_v21 = vpop.f32.mrb[7].mxu0  ;;  %v1153_v35 = vpop.f32.mrb[4].mxu1 }
 0x18f   : > { %v1120_v36 = vadd.f32 %v1119_v21, %v1118_v33  ;;  %v1154_v37 = vpop.f32.mrb[5].mxu1 }
 0x190   : > { %v1155_v34 = vadd.f32 %v1154_v37, %v1153_v35 }
 0x191   : > { %v609_v38 = vadd.f32 %v1120_v36, %v607_v39 }
 0x192   : > { %v741_v41 = vadd.f32 %v1155_v34, %v608_v17  ;;  %v1156_v42 = vpop.f32.mrb[6].mxu1 }
 0x193   : > { %611 = vst [vmem:[#allocation2 + $0x8] sm:$0x7] %v609_v38  ;;  %v1157_v43 = vpop.f32.mrb[7].mxu1 }
 0x194   : > { %743 = vst [vmem:[#allocation2] sm:$0xff] %v741_v41  ;;  %v1158_v44 = vadd.f32 %v1157_v43, %v1156_v42  ;;  %vm753_vm2 = vcmp.ge.f32.partialorder %v741_v41, %v995_v40 }
 0x195   : > { %998 = vmatmul.mubr.msk.f32.vlgmr.msra.gmra.mrb[8].mxu0 %vm753_vm2, %v1579_v45 }
 0x19a   : > { %v740_v46 = vld [vmem:[#allocation2 + $0x8] sm:$0x3] }
 0x19b   : > { %v742_v47 = vadd.f32 %v1158_v44, %v740_v46 }
 0x19d   : > { %744 = vst [vmem:[#allocation2 + $0x8] sm:$0x3] %v742_v47 }
 0x1a4   : > { %v746_v48 = vld [vmem:[#allocation2 + $0x8] sm:$0x7] }
 0x1a5   : > { %vm754_vm3 = vcmp.ge.f32.partialorder %v746_v48, %v995_v40 }
 0x1a6   : > { %999 = vmatmul.mubr.msk.f32.vlgmr.msra.gmra.mrb[8].mxu1 %vm754_vm3, %v1579_v45 }
 0x268   : > { %v857_v49 = vpop.f32.mrb[8].mxu0 }
 0x269   : > { %v868_v50 = vsub.f32 1.0, %v857_v49  ;;  %v859_v51 = vpop.f32.mrb[9].mxu0 }
 0x26a   : > { %v869_v52 = vsub.f32 1.0, %v859_v51 }
 0x26b   : > { %872 = vst [vmem:[%s244_s30] sm:$0xff] %v868_v50 }
 0x26c   : > { %873 = vst [vmem:[%s244_s30 + $0x8] sm:$0xff] %v869_v52 }
 0x279   : > { %v863_v53 = vpop.f32.mrb[8].mxu1 }
 0x27a   : > { %v870_v54 = vsub.f32 1.0, %v863_v53  ;;  %v865_v55 = vpop.f32.mrb[9].mxu1 }
 0x27b   : > { %v871_v56 = vsub.f32 1.0, %v865_v55 }
 0x27c   : > { %874 = vst [vmem:[%s244_s30 + $0x10] sm:$0x7] %v870_v54 }
 0x27d   : > { %875 = vst [vmem:[%s244_s30 + $0x18] sm:$0x7] %v871_v56 }
 0x27e   : > { %1511 = shalt.err (!%p1508_p5)
}
 0x27f   : > { %s1512_s5 = scalar_lea.hbm %s1837_s14, 512  ;;  %s1516_s12 = scalar_lea.hbm %s1885_s4, 1024 }
 0x280   : > { %p1513_p11 = scmp.ne.s32.totalorder %s1837_s14, %s1512_s5  ;;  %p1517_p6 = scmp.lt.u32.totalorder %s1837_s14, %s1885_s4 }
 0x281   : > { %p1518_p2 = scmp.lt.u32.totalorder %s1516_s12, %s1512_s5  ;;  %p1520_p7 = scmp.lt.u32.totalorder %s1512_s5, %s1837_s14 }
 0x282   : > { %p1514_p12 = pnand %p1513_p11, %p1907_p9 }
 0x283   : > { %p1519_p13 = por %p1518_p2, %p1517_p6 }
 0x284   : > { %p1515_p3 = pneg %p1514_p12 }
 0x285   : > { %p1521_p10 = por %p1520_p7, %p1519_p13 }
 0x287   : > { %p1522_p1 = pnand %p1521_p10, %p1515_p3 }
 0x289   : > { %1525 = shalt.err (!%p1522_p1)
}
 0x28a   : > { %s1581_s29 = smov 256   ;;  %s1582_s30 = smov 512  }
 0x28b   : > { %s1583_s25 = smov 16  }
 0x28c   : > { %1345 = dma.vmem_to_hbm [thread:$0]  (%p1907_p9), %s1832_s7, 512, %s1837_s14, %s877_s20, %s1581_s29, %s1582_s30, %s1583_s25  }
 0x28d PF: > { %s905_s6 = sand.u32 1, %s1556_s15   ;;  %p1908_p0 = scmp.ne.s32.totalorder %s1895_s28, 0 }
 0x28e   : > { %p1909_p4 = scmp.ge.s32.totalorder %s1568_s18, 2  ;;  %s906_s23 = scalar_lea.sflag [#allocation5], %s905_s6 }
 0x290   : > { %p1359_p8 = pnand %p1909_p4, %p1908_p0 }
 0x292   : > { %1551 = dma.done.wait (!%p1359_p8), %s906_s23, 512  }
 0x293   : > { %1553 = vsyncadd (!%p1359_p8), %s906_s23, 4294966784  ;;  %p18_p5 = scmp.ge.s32.totalorder %s1634_s21, 4   ;;  %s1910_s15 = smov %s1560_s16 }
 0x294   : > { %s1911_s16 = smov %s1564_s17  ;;  %s1912_s17 = smov %s1646_s24 }
 0x295   : > { %s1913_s18 = smov %s1634_s21  ;;  %20 = sbr.rel (!%p18_p5) target bundleno = 8 (0x8), region = 92 }
 0x29c   :  { %911 = vsyncpa [#allocation4], 1 }
 0x29d   :  { %913 = vsyncpa [#allocation4 + $0x1], 1 }
 0x29e   :  { %914 = vsyncpa [#allocation7], 1 }
 0x29f   :  { %915 = vsyncpa [#allocation5], 1 }
 0x2a0   :  { %917 = vsyncpa [#allocation5 + $0x1], 1 }

</bundles_post_ra>
